<compile_context>
chip_gen: v7x
topology: tpu7x:2x2x1
jax: 0.10.0
libtpu: 0.0.40
codegen_flags: <defaults>
</compile_context>

<pallas_src>
import functools
import numpy as np
import jax
import jax.numpy as jnp
from jax import lax
from jax.experimental import pallas as pl
from jax.experimental.pallas import tpu as pltpu

INPUT_DIM = 4
BIG_DIM = 32
HIDDEN_DIM = 2
BN_EPS = 1e-5

_VMEM = pl.BlockSpec(memory_space=pltpu.MemorySpace.VMEM)


def _align8(n):
    return ((n + 7) // 8) * 8


# ----------------------------------------------------------------------------
# Static layout of the packed weight/bias slab (row offsets are 8-aligned so
# every in-kernel slice starts on a sublane-tile boundary).
# ----------------------------------------------------------------------------
_W_LAYOUT = [
    ("bn_gamma", (1, INPUT_DIM)),
    ("bn_beta",  (1, INPUT_DIM)),
    ("enc_wi",   (INPUT_DIM, BIG_DIM)),       # enc_w1[:F] - enc_w1[F:]
    ("enc_wj",   (INPUT_DIM, BIG_DIM)),       # enc_w1[F:]
    ("enc_b1",   (1, BIG_DIM)),
    ("enc_w2",   (BIG_DIM, BIG_DIM)),
    ("enc_b2",   (1, BIG_DIM)),
    ("head_w",   (BIG_DIM, 2 * HIDDEN_DIM)),  # [mu_w | var_w]
    ("head_b",   (1, 2 * HIDDEN_DIM)),        # [mu_b | var_b]
    ("dec_wi",   (HIDDEN_DIM, BIG_DIM)),      # dec_w1[:H] - dec_w1[H:]
    ("dec_wj",   (HIDDEN_DIM, BIG_DIM)),      # dec_w1[H:]
    ("dec_b1",   (1, BIG_DIM)),
    ("dec_w2",   (BIG_DIM, BIG_DIM)),
    ("dec_b2",   (1, BIG_DIM)),
    ("dec_w3",   (BIG_DIM, INPUT_DIM)),
    ("dec_b3",   (1, INPUT_DIM)),
]
_W_SHAPES = dict(_W_LAYOUT)
_W_OFFSETS = {}
_off = 0
for _name, (_r, _c) in _W_LAYOUT:
    _W_OFFSETS[_name] = _off
    _off += _align8(_r)
W_SLAB_ROWS = _off          # 224
W_SLAB_COLS = BIG_DIM       # 32


# ----------------------------------------------------------------------------
# Fused kernel: the whole EdgeNetVAE forward pass (one pallas_call, VMEM-resident)
# ----------------------------------------------------------------------------
def edge_net_vae_kernel(x_ref, eps_ref, g_ref, w_ref, out_ref, *, n_edges):
    N = x_ref.shape[0]
    E = n_edges
    EA = _align8(E)

    def wget(name):
        r, c = _W_SHAPES[name]
        off = _W_OFFSETS[name]
        return w_ref[off:off + r, :c]

    # ---- BatchNorm1d (train mode: batch statistics, biased variance) ----
    x = x_ref[...]
    mean = jnp.mean(x, axis=0, keepdims=True)
    var = jnp.mean((x - mean) ** 2, axis=0, keepdims=True)
    x = (x - mean) * lax.rsqrt(var + BN_EPS) * wget("bn_gamma") + wget("bn_beta")

    # ---- Graph-static gather / normalized-mean-aggregation matrices (prebuilt) ----
    sel_tgt = g_ref[:E, :N]                       # [E, N] one-hot of tgt (x_i gather)
    sel_src = g_ref[EA:EA + E, :N]                # [E, N] one-hot of src (x_j gather)
    agg_norm = g_ref[2 * EA:2 * EA + N, :E]       # [N, E] scatter, pre-scaled by 1/deg

    def edgeconv(feat, wi, wj, b1, w2, b2, w3=None, b3=None):
        # First edge-MLP layer via weight split (no lane concat, no [E,2F] tensor):
        #   concat([x_i, x_j - x_i]) @ W1 == sel_tgt @ (feat @ wi) + sel_src @ (feat @ wj)
        proj_i = jnp.dot(feat, wi, preferred_element_type=jnp.float32)
        proj_j = jnp.dot(feat, wj, preferred_element_type=jnp.float32)
        h = (jnp.dot(sel_tgt, proj_i, preferred_element_type=jnp.float32)
             + jnp.dot(sel_src, proj_j, preferred_element_type=jnp.float32) + b1)
        h = jnp.maximum(h, 0.0)
        h = jnp.dot(h, w2, preferred_element_type=jnp.float32) + b2
        h = jnp.maximum(h, 0.0)
        if w3 is not None:
            h = jnp.dot(h, w3, preferred_element_type=jnp.float32) + b3
        return jnp.dot(agg_norm, h, preferred_element_type=jnp.float32)   # mean aggr

    # ---- Encoder EdgeConv ----
    h = edgeconv(x, wget("enc_wi"), wget("enc_wj"), wget("enc_b1"),
                 wget("enc_w2"), wget("enc_b2"))                           # [N, BIG]

    # ---- Fused mu / log_var head + reparameterization ----
    head = jnp.dot(h, wget("head_w"),
                   preferred_element_type=jnp.float32) + wget("head_b")    # [N, 2*HID]
    z = head[:, :HIDDEN_DIM] + eps_ref[...] * jnp.exp(0.5 * head[:, HIDDEN_DIM:])

    # ---- Decoder EdgeConv (last layer linear) ----
    x_out = edgeconv(z, wget("dec_wi"), wget("dec_wj"), wget("dec_b1"),
                     wget("dec_w2"), wget("dec_b2"),
                     wget("dec_w3"), wget("dec_b3"))                       # [N, INPUT]

    # ---- Single fused store: [x_out | mu | log_var] ----
    out_ref[...] = jnp.concatenate([x_out, head], axis=1)


# ----------------------------------------------------------------------------
# Packing helpers (run once, outside the hot path)
# ----------------------------------------------------------------------------
def pack_weights(params):
    """Pack all params into one [W_SLAB_ROWS, W_SLAB_COLS] f32 slab."""
    F, H = INPUT_DIM, HIDDEN_DIM
    blocks = {
        "bn_gamma": params["bn_gamma"],
        "bn_beta":  params["bn_beta"],
        "enc_wi":   params["enc_w1"][:F] - params["enc_w1"][F:],
        "enc_wj":   params["enc_w1"][F:],
        "enc_b1":   params["enc_b1"],
        "enc_w2":   params["enc_w2"],
        "enc_b2":   params["enc_b2"],
        "head_w":   jnp.concatenate([params["mu_w"], params["var_w"]], axis=1),
        "head_b":   jnp.concatenate([params["mu_b"], params["var_b"]], axis=1),
        "dec_wi":   params["dec_w1"][:H] - params["dec_w1"][H:],
        "dec_wj":   params["dec_w1"][H:],
        "dec_b1":   params["dec_b1"],
        "dec_w2":   params["dec_w2"],
        "dec_b2":   params["dec_b2"],
        "dec_w3":   params["dec_w3"],
        "dec_b3":   params["dec_b3"],
    }
    rows = []
    for name, (r, c) in _W_LAYOUT:
        b = blocks[name].astype(jnp.float32).reshape(r, c)
        b = jnp.pad(b, ((0, _align8(r) - r), (0, W_SLAB_COLS - c)))
        rows.append(b)
    return jnp.concatenate(rows, axis=0)


def pack_graph(src, tgt, num_nodes):
    """Precompute gather (one-hot) + degree-normalized aggregation matrices.

    NOTE: indices must lie in [0, num_nodes); out-of-range indices would
    silently drop edges (one-hot row of zeros), unlike a clamping gather.
    """
    E = src.shape[0]
    EA, NA = _align8(E), _align8(num_nodes)
    node_ids = jnp.arange(num_nodes, dtype=jnp.int32)[None, :]
    sel_tgt = (tgt.astype(jnp.int32)[:, None] == node_ids).astype(jnp.float32)  # [E, N]
    sel_src = (src.astype(jnp.int32)[:, None] == node_ids).astype(jnp.float32)  # [E, N]
    deg = jnp.sum(sel_tgt, axis=0)                                               # [N]
    agg_norm = sel_tgt.T / jnp.maximum(deg, 1.0)[:, None]                        # [N, E]
    width = max(num_nodes, E)

    def pad(a, rows):
        return jnp.pad(a, ((0, rows - a.shape[0]), (0, width - a.shape[1])))

    return jnp.concatenate([pad(sel_tgt, EA), pad(sel_src, EA),
                            pad(agg_norm, NA)], axis=0)                          # [2*EA+NA, width]


# ----------------------------------------------------------------------------
# Wrapper (hot path): exactly one pallas_call with 4 packed inputs, 1 output
# ----------------------------------------------------------------------------
def edge_net_vae_forward(graph_slab, w_slab, x, eps, *, n_edges):
    N = x.shape[0]
    out = pl.pallas_call(
        functools.partial(edge_net_vae_kernel, n_edges=n_edges),
        out_shape=jax.ShapeDtypeStruct((N, INPUT_DIM + 2 * HIDDEN_DIM), jnp.float32),
        in_specs=[_VMEM] * 4,
        out_specs=_VMEM,
    )(x, eps, graph_slab, w_slab)
    x_out = out[:, :INPUT_DIM]
    mu = out[:, INPUT_DIM:INPUT_DIM + HIDDEN_DIM]
    log_var = out[:, INPUT_DIM + HIDDEN_DIM:]
    return x_out, mu, log_var


# ----------------------------------------------------------------------------
# Pure-JAX reference (for sanity check)
# ----------------------------------------------------------------------------
def reference_forward(params, x, src, tgt, eps):
    N = x.shape[0]
    mean = jnp.mean(x, axis=0, keepdims=True)
    var = jnp.mean((x - mean) ** 2, axis=0, keepdims=True)
    x = (x - mean) / jnp.sqrt(var + BN_EPS) * params["bn_gamma"] + params["bn_beta"]

    def gather_edge_feats(feat):
        x_i = jnp.take(feat, tgt, axis=0)
        x_j = jnp.take(feat, src, axis=0)
        return jnp.concatenate([x_i, x_j - x_i], axis=1)

    def edgeconv(feat, layers, relu_last_off):
        h = gather_edge_feats(feat)
        for k, (w, b) in enumerate(layers):
            h = h @ w + b
            if not (relu_last_off and k == len(layers) - 1):
                h = jnp.maximum(h, 0.0)
        summed = jax.ops.segment_sum(h, tgt, num_segments=N)
        cnt = jax.ops.segment_sum(jnp.ones((h.shape[0], 1)), tgt, num_segments=N)
        return summed / jnp.maximum(cnt, 1.0)

    h = edgeconv(x, [(params["enc_w1"], params["enc_b1"]),
                     (params["enc_w2"], params["enc_b2"])], relu_last_off=False)
    mu = h @ params["mu_w"] + params["mu_b"]
    log_var = h @ params["var_w"] + params["var_b"]
    z = mu + eps * jnp.exp(0.5 * log_var)
    x_out = edgeconv(z, [(params["dec_w1"], params["dec_b1"]),
                         (params["dec_w2"], params["dec_b2"]),
                         (params["dec_w3"], params["dec_b3"])], relu_last_off=True)
    return x_out, mu, log_var


# ----------------------------------------------------------------------------
# Main
# ----------------------------------------------------------------------------
def init_params(key):
    def lin(k, fan_in, fan_out):
        kw, kb = jax.random.split(k)
        w = jax.random.normal(kw, (fan_in, fan_out), jnp.float32) * 0.1
        b = jax.random.normal(kb, (1, fan_out), jnp.float32) * 0.1
        return w, b

    keys = jax.random.split(key, 8)
    p = {}
    p["bn_gamma"] = jnp.ones((1, INPUT_DIM), jnp.float32)
    p["bn_beta"] = jnp.zeros((1, INPUT_DIM), jnp.float32)
    p["enc_w1"], p["enc_b1"] = lin(keys[0], 2 * INPUT_DIM, BIG_DIM)
    p["enc_w2"], p["enc_b2"] = lin(keys[1], BIG_DIM, BIG_DIM)
    p["mu_w"], p["mu_b"] = lin(keys[2], BIG_DIM, HIDDEN_DIM)
    p["var_w"], p["var_b"] = lin(keys[3], BIG_DIM, HIDDEN_DIM)
    p["dec_w1"], p["dec_b1"] = lin(keys[4], 2 * HIDDEN_DIM, BIG_DIM)
    p["dec_w2"], p["dec_b2"] = lin(keys[5], BIG_DIM, BIG_DIM)
    p["dec_w3"], p["dec_b3"] = lin(keys[6], BIG_DIM, INPUT_DIM)
    return p


if __name__ == "__main__":
    key = jax.random.PRNGKey(0)
    k_param, k_x, k_eps = jax.random.split(key, 3)

    N = 16                                  # number of graph nodes
    params = init_params(k_param)
    x = jax.random.normal(k_x, (N, INPUT_DIM), jnp.float32)

    # Simple deterministic graph: each node i receives edges from (i+1)%N and (i+2)%N.
    idx = jnp.arange(N, dtype=jnp.int32)
    src = jnp.concatenate([(idx + 1) % N, (idx + 2) % N])      # edge_index[0] (x_j)
    tgt = jnp.concatenate([idx, idx])                          # edge_index[1] (x_i)
    E = int(src.shape[0])

    # TODO(synk): reparameterization noise is supplied externally (eps) rather than
    # generated in-kernel with pltpu.prng_* so the PyTorch semantics stay checkable.
    eps = jax.random.normal(k_eps, (N, HIDDEN_DIM), jnp.float32)

    # Graph-static and parameter packing, hoisted out of the hot path (done once).
    graph_slab = jax.device_put(pack_graph(src, tgt, N))
    w_slab = jax.device_put(pack_weights(params))

    fwd = jax.jit(functools.partial(edge_net_vae_forward, n_edges=E))
    x_out, mu, log_var = fwd(graph_slab, w_slab, x, eps)
    jax.block_until_ready((x_out, mu, log_var))

    # Sanity check against pure-JAX reference.
    x_ref, mu_ref, lv_ref = reference_forward(params, x, src, tgt, eps)
    np.testing.assert_allclose(np.asarray(mu), np.asarray(mu_ref), atol=1e-3, rtol=1e-3)
    np.testing.assert_allclose(np.asarray(log_var), np.asarray(lv_ref), atol=1e-3, rtol=1e-3)
    np.testing.assert_allclose(np.asarray(x_out), np.asarray(x_ref), atol=1e-3, rtol=1e-3)

    print("KERNEL_OK")
</pallas_src>

<mosaic_0001>
module attributes {stable_mosaic.version = 11 : i64} {
  func.func @edge_net_vae_kernel(%arg0: memref<16x4xf32, #tpu.memory_space<vmem>>, %arg1: memref<16x2xf32, #tpu.memory_space<vmem>>, %arg2: memref<80x32xf32, #tpu.memory_space<vmem>>, %arg3: memref<224x32xf32, #tpu.memory_space<vmem>>, %arg4: memref<16x8xf32, #tpu.memory_space<vmem>>) attributes {dimension_semantics = [], scalar_prefetch = 0 : i64, scratch_operands = 0 : i64, tpu.core_type = #tpu.core_type<tc>} {
    %c0 = arith.constant 0 : index
    %c0_0 = arith.constant 0 : index
    %0 = vector.load %arg0[%c0, %c0_0] : memref<16x4xf32, #tpu.memory_space<vmem>>, vector<16x4xf32>
    %cst = arith.constant dense<0.000000e+00> : vector<4xf32>
    %1 = vector.multi_reduction <add>, %0, %cst [0] : vector<16x4xf32> to vector<4xf32>
    %2 = vector.shape_cast %1 : vector<4xf32> to vector<1x4xf32>
    %cst_1 = arith.constant 1.600000e+01 : f32
    %3 = vector.broadcast %cst_1 : f32 to vector<1x4xf32>
    %4 = arith.divf %2, %3 : vector<1x4xf32>
    %5 = vector.broadcast %4 : vector<1x4xf32> to vector<16x4xf32>
    %6 = arith.subf %0, %5 : vector<16x4xf32>
    %7 = arith.mulf %6, %6 : vector<16x4xf32>
    %cst_2 = arith.constant dense<0.000000e+00> : vector<4xf32>
    %8 = vector.multi_reduction <add>, %7, %cst_2 [0] : vector<16x4xf32> to vector<4xf32>
    %9 = vector.shape_cast %8 : vector<4xf32> to vector<1x4xf32>
    %cst_3 = arith.constant 1.600000e+01 : f32
    %10 = vector.broadcast %cst_3 : f32 to vector<1x4xf32>
    %11 = arith.divf %9, %10 : vector<1x4xf32>
    %12 = vector.broadcast %4 : vector<1x4xf32> to vector<16x4xf32>
    %13 = arith.subf %0, %12 : vector<16x4xf32>
    %cst_4 = arith.constant 9.99999974E-6 : f32
    %14 = vector.broadcast %cst_4 : f32 to vector<1x4xf32>
    %15 = arith.addf %11, %14 : vector<1x4xf32>
    %16 = math.rsqrt %15 : vector<1x4xf32>
    %17 = vector.broadcast %16 : vector<1x4xf32> to vector<16x4xf32>
    %18 = arith.mulf %13, %17 : vector<16x4xf32>
    %c0_5 = arith.constant 0 : index
    %c0_6 = arith.constant 0 : index
    %19 = vector.load %arg3[%c0_5, %c0_6] : memref<224x32xf32, #tpu.memory_space<vmem>>, vector<1x4xf32>
    %20 = vector.broadcast %19 : vector<1x4xf32> to vector<16x4xf32>
    %21 = arith.mulf %18, %20 : vector<16x4xf32>
    %c8 = arith.constant 8 : index
    %c0_7 = arith.constant 0 : index
    %22 = vector.load %arg3[%c8, %c0_7] : memref<224x32xf32, #tpu.memory_space<vmem>>, vector<1x4xf32>
    %23 = vector.broadcast %22 : vector<1x4xf32> to vector<16x4xf32>
    %24 = arith.addf %21, %23 : vector<16x4xf32>
    %c0_8 = arith.constant 0 : index
    %c0_9 = arith.constant 0 : index
    %25 = vector.load %arg2[%c0_8, %c0_9] : memref<80x32xf32, #tpu.memory_space<vmem>>, vector<32x16xf32>
    %c32 = arith.constant 32 : index
    %c0_10 = arith.constant 0 : index
    %26 = vector.load %arg2[%c32, %c0_10] : memref<80x32xf32, #tpu.memory_space<vmem>>, vector<32x16xf32>
    %c64 = arith.constant 64 : index
    %c0_11 = arith.constant 0 : index
    %27 = vector.load %arg2[%c64, %c0_11] : memref<80x32xf32, #tpu.memory_space<vmem>>, vector<16x32xf32>
    %c16 = arith.constant 16 : index
    %c0_12 = arith.constant 0 : index
    %28 = vector.load %arg3[%c16, %c0_12] : memref<224x32xf32, #tpu.memory_space<vmem>>, vector<4x32xf32>
    %c24 = arith.constant 24 : index
    %c0_13 = arith.constant 0 : index
    %29 = vector.load %arg3[%c24, %c0_13] : memref<224x32xf32, #tpu.memory_space<vmem>>, vector<4x32xf32>
    %c32_14 = arith.constant 32 : index
    %c0_15 = arith.constant 0 : index
    %30 = vector.load %arg3[%c32_14, %c0_15] : memref<224x32xf32, #tpu.memory_space<vmem>>, vector<1x32xf32>
    %c40 = arith.constant 40 : index
    %c0_16 = arith.constant 0 : index
    %31 = vector.load %arg3[%c40, %c0_16] : memref<224x32xf32, #tpu.memory_space<vmem>>, vector<32x32xf32>
    %c72 = arith.constant 72 : index
    %c0_17 = arith.constant 0 : index
    %32 = vector.load %arg3[%c72, %c0_17] : memref<224x32xf32, #tpu.memory_space<vmem>>, vector<1x32xf32>
    %cst_18 = arith.constant dense<0.000000e+00> : vector<16x32xf32>
    %33 = tpu.matmul %24, %28, %cst_18 {dimension_numbers = #tpu.dot_dimension_numbers<[1], [0], [0], [1], [0, 0, 1, 1], [], []>} : vector<16x4xf32>, vector<4x32xf32>, vector<16x32xf32> -> vector<16x32xf32>
    %cst_19 = arith.constant dense<0.000000e+00> : vector<16x32xf32>
    %34 = tpu.matmul %24, %29, %cst_19 {dimension_numbers = #tpu.dot_dimension_numbers<[1], [0], [0], [1], [0, 0, 1, 1], [], []>} : vector<16x4xf32>, vector<4x32xf32>, vector<16x32xf32> -> vector<16x32xf32>
    %cst_20 = arith.constant dense<0.000000e+00> : vector<32x32xf32>
    %35 = tpu.matmul %25, %33, %cst_20 {dimension_numbers = #tpu.dot_dimension_numbers<[1], [0], [0], [1], [0, 0, 1, 1], [], []>} : vector<32x16xf32>, vector<16x32xf32>, vector<32x32xf32> -> vector<32x32xf32>
    %cst_21 = arith.constant dense<0.000000e+00> : vector<32x32xf32>
    %36 = tpu.matmul %26, %34, %cst_21 {dimension_numbers = #tpu.dot_dimension_numbers<[1], [0], [0], [1], [0, 0, 1, 1], [], []>} : vector<32x16xf32>, vector<16x32xf32>, vector<32x32xf32> -> vector<32x32xf32>
    %37 = arith.addf %35, %36 : vector<32x32xf32>
    %38 = vector.broadcast %30 : vector<1x32xf32> to vector<32x32xf32>
    %39 = arith.addf %37, %38 : vector<32x32xf32>
    %cst_22 = arith.constant 0.000000e+00 : f32
    %40 = vector.broadcast %cst_22 : f32 to vector<32x32xf32>
    %41 = arith.maximumf %39, %40 : vector<32x32xf32>
    %cst_23 = arith.constant dense<0.000000e+00> : vector<32x32xf32>
    %42 = tpu.matmul %41, %31, %cst_23 {dimension_numbers = #tpu.dot_dimension_numbers<[1], [0], [0], [1], [0, 0, 1, 1], [], []>} : vector<32x32xf32>, vector<32x32xf32>, vector<32x32xf32> -> vector<32x32xf32>
    %43 = vector.broadcast %32 : vector<1x32xf32> to vector<32x32xf32>
    %44 = arith.addf %42, %43 : vector<32x32xf32>
    %cst_24 = arith.constant 0.000000e+00 : f32
    %45 = vector.broadcast %cst_24 : f32 to vector<32x32xf32>
    %46 = arith.maximumf %44, %45 : vector<32x32xf32>
    %cst_25 = arith.constant dense<0.000000e+00> : vector<16x32xf32>
    %47 = tpu.matmul %27, %46, %cst_25 {dimension_numbers = #tpu.dot_dimension_numbers<[1], [0], [0], [1], [0, 0, 1, 1], [], []>} : vector<16x32xf32>, vector<32x32xf32>, vector<16x32xf32> -> vector<16x32xf32>
    %c80 = arith.constant 80 : index
    %c0_26 = arith.constant 0 : index
    %48 = vector.load %arg3[%c80, %c0_26] : memref<224x32xf32, #tpu.memory_space<vmem>>, vector<32x4xf32>
    %cst_27 = arith.constant dense<0.000000e+00> : vector<16x4xf32>
    %49 = tpu.matmul %47, %48, %cst_27 {dimension_numbers = #tpu.dot_dimension_numbers<[1], [0], [0], [1], [0, 0, 1, 1], [], []>} : vector<16x32xf32>, vector<32x4xf32>, vector<16x4xf32> -> vector<16x4xf32>
    %c112 = arith.constant 112 : index
    %c0_28 = arith.constant 0 : index
    %50 = vector.load %arg3[%c112, %c0_28] : memref<224x32xf32, #tpu.memory_space<vmem>>, vector<1x4xf32>
    %51 = vector.broadcast %50 : vector<1x4xf32> to vector<16x4xf32>
    %52 = arith.addf %49, %51 : vector<16x4xf32>
    %53 = vector.extract_strided_slice %52 {offsets = [0, 0], sizes = [16, 2], strides = [1, 1]} : vector<16x4xf32> to vector<16x2xf32>
    %c0_29 = arith.constant 0 : index
    %c0_30 = arith.constant 0 : index
    %54 = vector.load %arg1[%c0_29, %c0_30] : memref<16x2xf32, #tpu.memory_space<vmem>>, vector<16x2xf32>
    %55 = vector.extract_strided_slice %52 {offsets = [0, 2], sizes = [16, 2], strides = [1, 1]} : vector<16x4xf32> to vector<16x2xf32>
    %cst_31 = arith.constant 5.000000e-01 : f32
    %56 = vector.broadcast %cst_31 : f32 to vector<16x2xf32>
    %57 = arith.mulf %56, %55 : vector<16x2xf32>
    %58 = math.exp %57 : vector<16x2xf32>
    %59 = arith.mulf %54, %58 : vector<16x2xf32>
    %60 = arith.addf %53, %59 : vector<16x2xf32>
    %c120 = arith.constant 120 : index
    %c0_32 = arith.constant 0 : index
    %61 = vector.load %arg3[%c120, %c0_32] : memref<224x32xf32, #tpu.memory_space<vmem>>, vector<2x32xf32>
    %c128 = arith.constant 128 : index
    %c0_33 = arith.constant 0 : index
    %62 = vector.load %arg3[%c128, %c0_33] : memref<224x32xf32, #tpu.memory_space<vmem>>, vector<2x32xf32>
    %c136 = arith.constant 136 : index
    %c0_34 = arith.constant 0 : index
    %63 = vector.load %arg3[%c136, %c0_34] : memref<224x32xf32, #tpu.memory_space<vmem>>, vector<1x32xf32>
    %c144 = arith.constant 144 : index
    %c0_35 = arith.constant 0 : index
    %64 = vector.load %arg3[%c144, %c0_35] : memref<224x32xf32, #tpu.memory_space<vmem>>, vector<32x32xf32>
    %c176 = arith.constant 176 : index
    %c0_36 = arith.constant 0 : index
    %65 = vector.load %arg3[%c176, %c0_36] : memref<224x32xf32, #tpu.memory_space<vmem>>, vector<1x32xf32>
    %c184 = arith.constant 184 : index
    %c0_37 = arith.constant 0 : index
    %66 = vector.load %arg3[%c184, %c0_37] : memref<224x32xf32, #tpu.memory_space<vmem>>, vector<32x4xf32>
    %c216 = arith.constant 216 : index
    %c0_38 = arith.constant 0 : index
    %67 = vector.load %arg3[%c216, %c0_38] : memref<224x32xf32, #tpu.memory_space<vmem>>, vector<1x4xf32>
    %cst_39 = arith.constant dense<0.000000e+00> : vector<16x32xf32>
    %68 = tpu.matmul %60, %61, %cst_39 {dimension_numbers = #tpu.dot_dimension_numbers<[1], [0], [0], [1], [0, 0, 1, 1], [], []>} : vector<16x2xf32>, vector<2x32xf32>, vector<16x32xf32> -> vector<16x32xf32>
    %cst_40 = arith.constant dense<0.000000e+00> : vector<16x32xf32>
    %69 = tpu.matmul %60, %62, %cst_40 {dimension_numbers = #tpu.dot_dimension_numbers<[1], [0], [0], [1], [0, 0, 1, 1], [], []>} : vector<16x2xf32>, vector<2x32xf32>, vector<16x32xf32> -> vector<16x32xf32>
    %cst_41 = arith.constant dense<0.000000e+00> : vector<32x32xf32>
    %70 = tpu.matmul %25, %68, %cst_41 {dimension_numbers = #tpu.dot_dimension_numbers<[1], [0], [0], [1], [0, 0, 1, 1], [], []>} : vector<32x16xf32>, vector<16x32xf32>, vector<32x32xf32> -> vector<32x32xf32>
    %cst_42 = arith.constant dense<0.000000e+00> : vector<32x32xf32>
    %71 = tpu.matmul %26, %69, %cst_42 {dimension_numbers = #tpu.dot_dimension_numbers<[1], [0], [0], [1], [0, 0, 1, 1], [], []>} : vector<32x16xf32>, vector<16x32xf32>, vector<32x32xf32> -> vector<32x32xf32>
    %72 = arith.addf %70, %71 : vector<32x32xf32>
    %73 = vector.broadcast %63 : vector<1x32xf32> to vector<32x32xf32>
    %74 = arith.addf %72, %73 : vector<32x32xf32>
    %cst_43 = arith.constant 0.000000e+00 : f32
    %75 = vector.broadcast %cst_43 : f32 to vector<32x32xf32>
    %76 = arith.maximumf %74, %75 : vector<32x32xf32>
    %cst_44 = arith.constant dense<0.000000e+00> : vector<32x32xf32>
    %77 = tpu.matmul %76, %64, %cst_44 {dimension_numbers = #tpu.dot_dimension_numbers<[1], [0], [0], [1], [0, 0, 1, 1], [], []>} : vector<32x32xf32>, vector<32x32xf32>, vector<32x32xf32> -> vector<32x32xf32>
    %78 = vector.broadcast %65 : vector<1x32xf32> to vector<32x32xf32>
    %79 = arith.addf %77, %78 : vector<32x32xf32>
    %cst_45 = arith.constant 0.000000e+00 : f32
    %80 = vector.broadcast %cst_45 : f32 to vector<32x32xf32>
    %81 = arith.maximumf %79, %80 : vector<32x32xf32>
    %cst_46 = arith.constant dense<0.000000e+00> : vector<32x4xf32>
    %82 = tpu.matmul %81, %66, %cst_46 {dimension_numbers = #tpu.dot_dimension_numbers<[1], [0], [0], [1], [0, 0, 1, 1], [], []>} : vector<32x32xf32>, vector<32x4xf32>, vector<32x4xf32> -> vector<32x4xf32>
    %83 = vector.broadcast %67 : vector<1x4xf32> to vector<32x4xf32>
    %84 = arith.addf %82, %83 : vector<32x4xf32>
    %cst_47 = arith.constant dense<0.000000e+00> : vector<16x4xf32>
    %85 = tpu.matmul %27, %84, %cst_47 {dimension_numbers = #tpu.dot_dimension_numbers<[1], [0], [0], [1], [0, 0, 1, 1], [], []>} : vector<16x32xf32>, vector<32x4xf32>, vector<16x4xf32> -> vector<16x4xf32>
    %86 = tpu.concatenate %85, %52 in 1 : vector<16x4xf32>, vector<16x4xf32> -> vector<16x8xf32>
    %c0_48 = arith.constant 0 : index
    %c0_49 = arith.constant 0 : index
    %87 = vector.load %arg4[%c0_48, %c0_49] : memref<16x8xf32, #tpu.memory_space<vmem>>, vector<16x8xf32>
    tpu.vector_store %arg4[%c0_48, %c0_49], %86 {strides = array<i32>} : memref<16x8xf32, #tpu.memory_space<vmem>>, vector<16x8xf32>,
    return
  }
}

</mosaic_0001>

<bundles_post_ra>
// kernel: edge_net_vae_forward.1
= control target key start
LH: loop header
LB: loop body
LE: loop exit
PB: predicated region body
PF: predicated region fallthrough
CT: control target
= control target key end

     0   :  { %vm87_vm0 = vcmask 1043456   ;;  %vm19_vm1 = vcmask 31744   ;;  %vm244_vm2 = vcmask 130048   ;;  %vm455_vm3 = vcmask 261120   ;;  %s1753_s19 = smov 126   ;;  %s1995_s3 = inlined_call_operand.vmem [shape: f32[224,32], index: 3, kind: input, shape index: {}]   ;;  %s1996_s0 = inlined_call_operand.vmem [shape: f32[16,4], index: 0, kind: input, shape index: {}]   ;;  %s1997_s2 = inlined_call_operand.vmem [shape: f32[80,32], index: 2, kind: input, shape index: {}]   ;;  %s1998_s1 = inlined_call_operand.vmem [shape: f32[16,2], index: 1, kind: input, shape index: {}]   ;;  %s1999_s4 = inlined_call_operand.vmem [shape: f32[16,8], index: 4, kind: output, shape index: {}]  }
   0x1   :  { %v74_v0 = vld [vmem:[%s1995_s3 + $0x18] sm:$0xf]  ;;  %v17_v1 = vld [vmem:[%s1996_s0] sm:$0xff]  ;;  %v18_v2 = vld [vmem:[%s1996_s0 + $0x8] sm:$0xff]  ;;  %vm768_vm4 = vcmask 1041408   ;;  %vm761_vm5 = vcmask 15360  }
   0x2   :  { %1542 = vmatprep.subr.msk.mxu1 %vm87_vm0, %v74_v0  ;;  %v20_v3 = vsel %vm19_vm1, %v17_v1, 0.0  ;;  %v21_v4 = vsel %vm19_vm1, %v18_v2, 0.0  ;;  %v73_v6 = vld [vmem:[%s1995_s3 + $0x10] sm:$0xf]  ;;  %v1405_v30 = vld [vmem:[%s1995_s3] ss:$0 sm:$0xff] }
   0x3   :  { %1543 = vmatpush3.msk.msra.mxu1 %vm87_vm0, %v74_v0  ;;  %v22_v5 = vadd.f32 %v21_v4, %v20_v3  ;;  %1537 = vmatprep.subr.msk.mxu0 %vm87_vm0, %v73_v6  ;;  %v1406_v33 = vld [vmem:[%s1995_s3 + $0x8] ss:$0 sm:$0xff]  ;;  %v1808_v38 = vld [vmem:[%s1997_s2 + $0x20] sm:$0xff]  ;;  %v77_v40 = vld [vmem:[%s1995_s3 + $0x30] sm:$0xff]  ;;  %vm1398_vm6 = vcmask 64512  }
   0x4   :  { %1538 = vmatpush3.msk.msra.mxu0 %vm87_vm0, %v73_v6  ;;  %v76_v39 = vld [vmem:[%s1995_s3 + $0x28] sm:$0xff]  ;;  %v1826_v49 = vld [vmem:[%s1997_s2 + $0x30] sm:$0xff]  ;;  %v1835_v50 = vld [vmem:[%s1997_s2 + $0x38] sm:$0xff] }
   0x5   :  { %v23_v7 = vrot.slane %v22_v5, 4  ;;  %v1680_v41 = vpack.c.bf16 %v77_v40, %v76_v39  ;;  %v1821_v48 = vld [vmem:[%s1997_s2 + $0x28] sm:$0xff]  ;;  %v1840_v51 = vld [vmem:[%s1997_s2] sm:$0xff]  ;;  %v1854_v53 = vld [vmem:[%s1997_s2 + $0x10] sm:$0xff] }
   0x6   :  { %v1849_v52 = vld [vmem:[%s1997_s2 + $0x8] sm:$0xff]  ;;  %v1863_v54 = vld [vmem:[%s1997_s2 + $0x18] sm:$0xff]  ;;  %v79_v56 = vld [vmem:[%s1995_s3 + $0x40] sm:$0xff] }
   0x7   :  { %v24_v8 = vadd.f32 %v23_v7, %v22_v5  ;;  %1681 = vmatprep.subr.bf16.mxu1 %v1680_v41  ;;  %v78_v55 = vld [vmem:[%s1995_s3 + $0x38] sm:$0xff]  ;;  %v1421_v58 = vld [vmem:[%s1995_s3 + $0x20] ss:$0 sm:$0xff] }
   0x8   :  { %v1684_v57 = vpack.c.bf16 %v79_v56, %v78_v55  ;;  %v1883_v7 = vld [vmem:[%s1997_s2 + $0x40] sm:$0xff]  ;;  %v729_v56 = vld [vmem:[%s1998_s1 + $0x8] sm:$0xff] }
   0x9   :  { %v25_v9 = vrot.slane %v24_v8, 2 }
   0xb   :  { %v26_v10 = vadd.f32 %v25_v9, %v24_v8  ;;  %v638_v8 = vld [vmem:[%s1995_s3 + $0x50] sm:$0xff]  ;;  %v639_v9 = vld [vmem:[%s1995_s3 + $0x58] sm:$0xff] }
   0xd   :  { %v27_v11 = vrot.slane %v26_v10, 1 }
   0xf   :  { %v28_v12 = vadd.f32 %v27_v11, %v26_v10  ;;  %v640_v10 = vld [vmem:[%s1995_s3 + $0x60] sm:$0xff]  ;;  %v1696_v11 = vpack.c.bf16 %v639_v9, %v638_v8 }
  0x11   :  { %v30_v13 = vmul.f32 0.0625, %v28_v12  ;;  %v641_v12 = vld [vmem:[%s1995_s3 + $0x68] sm:$0xff] }
  0x13   :  { %v31_v14 = vsub.f32 %v17_v1, %v30_v13  ;;  %v32_v15 = vsub.f32 %v18_v2, %v30_v13  ;;  %v1700_v13 = vpack.c.bf16 %v641_v12, %v640_v10 }
  0x15   :  { %v33_v16 = vmul.f32 %v31_v14, %v31_v14  ;;  %v34_v17 = vmul.f32 %v32_v15, %v32_v15 }
  0x17   :  { %v35_v18 = vsel %vm19_vm1, %v33_v16, 0.0  ;;  %v36_v19 = vsel %vm19_vm1, %v34_v17, 0.0 }
  0x18   :  { %v37_v20 = vadd.f32 %v36_v19, %v35_v18 }
  0x1a   :  { %v38_v21 = vrot.slane %v37_v20, 4 }
  0x1c   :  { %v39_v22 = vadd.f32 %v38_v21, %v37_v20 }
  0x1e   :  { %v40_v23 = vrot.slane %v39_v22, 2 }
  0x20   :  { %v41_v24 = vadd.f32 %v40_v23, %v39_v22 }
  0x22   :  { %v42_v25 = vrot.slane %v41_v24, 1 }
  0x24   :  { %v43_v26 = vadd.f32 %v42_v25, %v41_v24 }
  0x26   :  { %v44_v27 = vmul.f32 0.0625, %v43_v26 }
  0x28   :  { %v45_v28 = vadd.f32 1e-05, %v44_v27 }
  0x2a   :  { %1746 = vrsqrt.f32 %v45_v28 }
  0x34   :  { %v1747_v29 = vpop.eup %1746 }
  0x35   :  { %v47_v31 = vmul.f32 %v1747_v29, %v31_v14  ;;  %v48_v32 = vmul.f32 %v1747_v29, %v32_v15  ;;  %v1422_v14 = vld [vmem:[%s1995_s3 + $0x48] ss:$0 sm:$0xff] }
  0x36   :  { %v1905_v29 = vld [vmem:[%s1997_s2 + $0x48] sm:$0xff]  ;;  %s1752_s2 = smov 4  }
  0x37   :  { %v54_v34 = vmul.f32 %v1405_v30, %v47_v31  ;;  %v55_v35 = vmul.f32 %v1405_v30, %v48_v32  ;;  %v1429_v32 = vld [vmem:[%s1995_s3 + $0x70] ss:$0 sm:$0xff] }
  0x39   :  { %v61_v36 = vadd.f32 %v1406_v33, %v54_v34  ;;  %v62_v37 = vadd.f32 %v1406_v33, %v55_v35 }
  0x3b   :  { %1544 = vmatprep.mubr.msk.f32.mxu1 %vm19_vm1, %v61_v36  ;;  %1539 = vmatprep.mubr.msk.f32.mxu0 %vm19_vm1, %v61_v36 }
  0x3c   :  { %1545 = vmatmul.mubr.msk.f32.vlgmr.msra.gmra.mrb[0].mxu1 %vm19_vm1, %v62_v37  ;;  %1540 = vmatmul.mubr.msk.f32.vlgmr.msra.gmra.mrb[0].mxu0 %vm19_vm1, %v62_v37 }
  0x3d   :  { %1551 = vmatprep.mubr.msk.f32.mxu0 %vm244_vm2, %v1808_v38  ;;  %1683 = vmatpush3.bf16.msra.mxu1 %v1680_v41 }
  0x3e   :  { %1685 = vmatprep.subr.bf16.mxu1 %v1684_v57 }
  0x41   :  { %1687 = vmatpush3.bf16.msra.mxu1 %v1684_v57 }
 0x10f   :  { %v1546_v42 = vpop.f32.mrb[0].mxu1  ;;  %v1541_v43 = vpop.f32.mrb[0].mxu0 }
 0x110   :  { %v235_v44 = vpop.f32.mrb[1].mxu1  ;;  %v157_v45 = vpop.f32.mrb[1].mxu0 }
 0x111   :  { %v1672_v46 = vpack.c.bf16 %v1546_v42, %v235_v44  ;;  %v1676_v47 = vpack.c.bf16 %v1541_v43, %v157_v45  ;;  %v749_v42 = vld [vmem:[%s1995_s3 + $0x80] sm:$0x3]  ;;  %v748_v43 = vld [vmem:[%s1995_s3 + $0x78] sm:$0x3] }
 0x113   :  { %1673 = vmatprep.subr.bf16.mxu0 %v1672_v46 }
 0x114   :  { %1675 = vmatpush3.bf16.msra.mxu0 %v1672_v46  ;;  %v728_v46 = vld [vmem:[%s1998_s1] sm:$0xff] }
 0x115   :  { %1677 = vmatprep.subr.bf16.mxu0 %v1676_v47 }
 0x117   :  { %1552 = vmatmul.mubr.msk.f32.vlgmr.msra.gmra.mrb[2].mxu0 %vm244_vm2, %v1821_v48 }
 0x118   :  { %1679 = vmatpush3.bf16.msra.mxu0 %v1676_v47  ;;  %1554 = vmatprep.mubr.msk.f32.mxu0 %vm244_vm2, %v1826_v49 }
 0x119   :  { %1697 = vmatprep.subr.bf16.mxu0 %v1696_v11 }
 0x11b   :  { %1555 = vmatmul.mubr.msk.f32.gmra.mrb[4].mxu0 %vm244_vm2, %v1835_v50 }
 0x11c   :  { %1561 = vmatprep.mubr.msk.f32.mxu0 %vm244_vm2, %v1840_v51 }
 0x11f   :  { %1562 = vmatmul.mubr.msk.f32.vlgmr.msra.gmra.mrb[2].mxu0 %vm244_vm2, %v1849_v52 }
 0x120   :  { %1564 = vmatprep.mubr.msk.f32.mxu0 %vm244_vm2, %v1854_v53  ;;  %1699 = vmatpush3.bf16.msra.mxu0 %v1696_v11 }
 0x121   :  { %1701 = vmatprep.subr.bf16.mxu0 %v1700_v13 }
 0x123   :  { %1565 = vmatmul.mubr.msk.f32.gmra.mrb[4].mxu0 %vm244_vm2, %v1863_v54 }
 0x124   :  { %1703 = vmatpush3.bf16.msra.mxu0 %v1700_v13 }
 0x125   :  { %1608 = vmatprep.subr.msk.mxu0 %vm768_vm4, %v749_v42 }
 0x1f2   :  { %v1563_v59 = vpop.f32.mrb[2].mxu0 }
 0x1f3   :  { %v444_v60 = vadd.f32 %v1563_v59, %v1421_v58  ;;  %v420_v61 = vpop.f32.mrb[3].mxu0 }
 0x1f4   :  { %v443_v62 = vadd.f32 %v1421_v58, %v420_v61  ;;  %v751_v61 = vld [vmem:[%s1995_s3 + $0x90] sm:$0xff] }
 0x1f5   :  { %v448_v1 = vmax.f32 %v444_v60, 0.0 }
 0x1f6   :  { %v447_v63 = vmax.f32 %v443_v62, 0.0  ;;  %v1566_v0 = vpop.f32.mrb[4].mxu0  ;;  %v752_v62 = vld [vmem:[%s1995_s3 + $0x98] sm:$0xff] }
 0x1f7   :  { %v446_v2 = vadd.f32 %v1566_v0, %v1421_v58  ;;  %v430_v3 = vpop.f32.mrb[5].mxu0 }
 0x1f8   :  { %v445_v4 = vadd.f32 %v1421_v58, %v430_v3  ;;  %1575 = vmatprep.mubr.msk.f32.mxu1 %vm455_vm3, %v447_v63  ;;  %v1712_v63 = vpack.c.bf16 %v752_v62, %v751_v61 }
 0x1f9   :  { %1576 = vmatmul.mubr.msk.f32.vlgmr.msra.gmra.mrb[2].mxu1 %vm455_vm3, %v448_v1  ;;  %v450_v6 = vmax.f32 %v446_v2, 0.0 }
 0x1fa   :  { %v449_v5 = vmax.f32 %v445_v4, 0.0 }
 0x1fc   :  { %1578 = vmatprep.mubr.msk.f32.mxu1 %vm455_vm3, %v449_v5 }
 0x1fd   :  { %1579 = vmatmul.mubr.msk.f32.gmra.mrb[4].mxu1 %vm455_vm3, %v450_v6 }
 0x1fe   :  { %1589 = vmatprep.mubr.msk.f32.mxu1 %vm455_vm3, %v1883_v7 }
 0x2cc   :  { %v1577_v15 = vpop.f32.mrb[2].mxu1 }
 0x2cd   :  { %v540_v16 = vadd.f32 %v1577_v15, %v1422_v14  ;;  %v534_v17 = vpop.f32.mrb[3].mxu1 }
 0x2ce   :  { %v535_v18 = vadd.f32 %v1422_v14, %v534_v17  ;;  %v758_v17 = vld [vmem:[%s1995_s3 + $0xc8] sm:$0xff] }
 0x2cf   :  { %v554_v19 = vmax.f32 %v540_v16, 0.0 }
 0x2d0   :  { %v553_v20 = vmax.f32 %v535_v18, 0.0  ;;  %v1580_v21 = vpop.f32.mrb[4].mxu1  ;;  %v759_v18 = vld [vmem:[%s1995_s3 + $0xd0] sm:$0xff] }
 0x2d1   :  { %v550_v22 = vadd.f32 %v1580_v21, %v1422_v14  ;;  %v544_v23 = vpop.f32.mrb[5].mxu1 }
 0x2d2   :  { %v1688_v24 = vpack.c.bf16 %v554_v19, %v553_v20  ;;  %v545_v25 = vadd.f32 %v1422_v14, %v544_v23  ;;  %v1724_v19 = vpack.c.bf16 %v759_v18, %v758_v17  ;;  %v1447_v20 = vld [vmem:[%s1995_s3 + $0xb0] ss:$0 sm:$0xff] }
 0x2d3   :  { %v556_v26 = vmax.f32 %v550_v22, 0.0 }
 0x2d4   :  { %v555_v27 = vmax.f32 %v545_v25, 0.0  ;;  %1689 = vmatprep.subr.bf16.mxu1 %v1688_v24 }
 0x2d5   :  { %1691 = vmatpush3.bf16.msra.mxu1 %v1688_v24 }
 0x2d6   :  { %v1692_v28 = vpack.c.bf16 %v556_v26, %v555_v27 }
 0x2d8   :  { %1693 = vmatprep.subr.bf16.mxu1 %v1692_v28 }
 0x2d9   :  { %1695 = vmatpush3.bf16.msra.mxu1 %v1692_v28 }
 0x2da   :  { %1603 = vmatprep.subr.msk.mxu1 %vm768_vm4, %v748_v43 }
 0x2dc   :  { %1590 = vmatmul.mubr.msk.f32.vlgmr.msra.gmra.mrb[6].mxu1 %vm455_vm3, %v1905_v29 }
 0x2dd   :  { %1604 = vmatpush3.msk.msra.mxu1 %vm768_vm4, %v748_v43 }
 0x3af   :  { %v1591_v30 = vpop.f32.mrb[6].mxu1 }
 0x3b0   :  { %v629_v31 = vpop.f32.mrb[7].mxu1 }
 0x3b1   :  { %1600 = vmatprep.mubr.msk.f32.mxu0 %vm455_vm3, %v629_v31 }
 0x3b2   :  { %1601 = vmatmul.mubr.msk.f32.vlgmr.msra.gmra.mrb[6].mxu0 %vm455_vm3, %v1591_v30 }
 0x3b3   :  { %1609 = vmatpush3.msk.msra.mxu0 %vm768_vm4, %v749_v42 }
 0x3b4   :  { %1713 = vmatprep.subr.bf16.mxu0 %v1712_v63 }
 0x485   :  { %v1602_v33 = vpop.f32.mrb[6].mxu0 }
 0x486   :  { %v725_v34 = vadd.f32 %v1602_v33, %v1429_v32  ;;  %v719_v35 = vpop.f32.mrb[7].mxu0 }
 0x487   :  { %v720_v36 = vadd.f32 %v1429_v32, %v719_v35 }
 0x488   :  { %v731_v37 = vmul.f32 0.5, %v725_v34 }
 0x489   :  { %v730_v39 = vmul.f32 0.5, %v720_v36  ;;  %1390 = vrot.lane.b32.xlu1 %v720_v36, %s1752_s2 }
 0x48a   :  { %v734_v41 = vmul.f32 1.442695, %v731_v37 }
 0x48b   :  { %v732_v40 = vmul.f32 1.442695, %v730_v39 }
 0x48d   :  { %1748 = vpow2.f32 %v732_v40  ;;  %1392 = vrot.lane.b32.xlu1 %v725_v34, %s1752_s2 }
 0x48e   :  { %1750 = vpow2.f32 %v734_v41 }
 0x497   :  { %v1749_v44 = vpop.eup %1748 }
 0x498   :  { %738 = vrot.lane.b32.xlu0 %v1749_v44, %s1753_s19  ;;  %v1751_v45 = vpop.eup %1750 }
 0x49c   :  { %740 = vrot.lane.b32.xlu0 %v1751_v45, %s1753_s19 }
 0x50a   :  { %v739_v47 = vpop.permute.xlu0 %738 }
 0x50b   :  { %v744_v55 = vmul.f32 %v739_v47, %v728_v46  ;;  %v1391_v46 = vpop.permute.xlu1 %1390 }
 0x50d   :  { %v746_v57 = vadd.f32 %v744_v55, %v720_v36 }
 0x50e   :  { %v741_v58 = vpop.permute.xlu0 %740 }
 0x50f   :  { %v745_v59 = vmul.f32 %v741_v58, %v729_v56  ;;  %1605 = vmatprep.mubr.msk.f32.mxu1 %vm761_vm5, %v746_v57  ;;  %1610 = vmatprep.mubr.msk.f32.mxu0 %vm761_vm5, %v746_v57  ;;  %v1393_v47 = vpop.permute.xlu1 %1392 }
 0x511   :  { %v747_v60 = vadd.f32 %v745_v59, %v725_v34  ;;  %v1452_v34 = vld [vmem:[%s1995_s3 + $0xd8] ss:$0 sm:$0xff] }
 0x513   :  { %1606 = vmatmul.mubr.msk.f32.vlgmr.msra.gmra.mrb[8].mxu1 %vm761_vm5, %v747_v60  ;;  %1611 = vmatmul.mubr.msk.f32.vlgmr.msra.gmra.mrb[8].mxu0 %vm761_vm5, %v747_v60 }
 0x514   :  { %1617 = vmatprep.mubr.msk.f32.mxu1 %vm244_vm2, %v1808_v38  ;;  %1715 = vmatpush3.bf16.msra.mxu0 %v1712_v63  ;;  %v753_v38 = vld [vmem:[%s1995_s3 + $0xa0] sm:$0xff] }
 0x5e6   :  { %v1607_v0 = vpop.f32.mrb[8].mxu1  ;;  %v1612_v1 = vpop.f32.mrb[8].mxu0 }
 0x5e7   :  { %v838_v2 = vpop.f32.mrb[9].mxu1  ;;  %v916_v3 = vpop.f32.mrb[9].mxu0 }
 0x5e8   :  { %v1708_v4 = vpack.c.bf16 %v1607_v0, %v838_v2  ;;  %v1704_v5 = vpack.c.bf16 %v1612_v1, %v916_v3 }
 0x5ea   :  { %1705 = vmatprep.subr.bf16.mxu1 %v1704_v5 }
 0x5eb   :  { %1707 = vmatpush3.bf16.msra.mxu1 %v1704_v5 }
 0x5ec   :  { %1709 = vmatprep.subr.bf16.mxu1 %v1708_v4 }
 0x5ee   :  { %1618 = vmatmul.mubr.msk.f32.vlgmr.msra.gmra.mrb[10].mxu1 %vm244_vm2, %v1821_v48  ;;  %v754_v48 = vld [vmem:[%s1995_s3 + $0xa8] sm:$0xff] }
 0x5ef   :  { %1711 = vmatpush3.bf16.msra.mxu1 %v1708_v4  ;;  %1620 = vmatprep.mubr.msk.f32.mxu1 %vm244_vm2, %v1826_v49  ;;  %v1716_v49 = vpack.c.bf16 %v754_v48, %v753_v38 }
 0x5f1   :  { %1717 = vmatprep.subr.bf16.mxu0 %v1716_v49 }
 0x5f2   :  { %1621 = vmatmul.mubr.msk.f32.gmra.mrb[12].mxu1 %vm244_vm2, %v1835_v50  ;;  %1719 = vmatpush3.bf16.msra.mxu0 %v1716_v49  ;;  %v756_v50 = vld [vmem:[%s1995_s3 + $0xb8] sm:$0xff] }
 0x5f3   :  { %1627 = vmatprep.mubr.msk.f32.mxu1 %vm244_vm2, %v1840_v51  ;;  %v757_v51 = vld [vmem:[%s1995_s3 + $0xc0] sm:$0xff] }
 0x5f6   :  { %1628 = vmatmul.mubr.msk.f32.vlgmr.msra.gmra.mrb[10].mxu1 %vm244_vm2, %v1849_v52  ;;  %v1720_v52 = vpack.c.bf16 %v757_v51, %v756_v50 }
 0x5f7   :  { %1630 = vmatprep.mubr.msk.f32.mxu1 %vm244_vm2, %v1854_v53  ;;  %v1446_v53 = vld [vmem:[%s1995_s3 + $0x88] ss:$0 sm:$0xff] }
 0x5f8   :  { %1721 = vmatprep.subr.bf16.mxu0 %v1720_v52 }
 0x5fa   :  { %1631 = vmatmul.mubr.msk.f32.gmra.mrb[12].mxu1 %vm244_vm2, %v1863_v54 }
 0x5fb   :  { %1669 = vmatprep.mubr.msk.f32.mxu1 %vm455_vm3, %v1883_v7 }
 0x6c9   :  { %v1629_v54 = vpop.f32.mrb[10].mxu1 }
 0x6ca   :  { %v1100_v6 = vadd.f32 %v1629_v54, %v1446_v53  ;;  %v1076_v7 = vpop.f32.mrb[11].mxu1 }
 0x6cb   :  { %v1099_v8 = vadd.f32 %v1446_v53, %v1076_v7 }
 0x6cc   :  { %v1104_v11 = vmax.f32 %v1100_v6, 0.0 }
 0x6cd   :  { %v1103_v9 = vmax.f32 %v1099_v8, 0.0  ;;  %v1632_v10 = vpop.f32.mrb[12].mxu1 }
 0x6ce   :  { %v1102_v12 = vadd.f32 %v1632_v10, %v1446_v53  ;;  %v1086_v13 = vpop.f32.mrb[13].mxu1 }
 0x6cf   :  { %v1101_v14 = vadd.f32 %v1446_v53, %v1086_v13  ;;  %1641 = vmatprep.mubr.msk.f32.mxu0 %vm455_vm3, %v1103_v9 }
 0x6d0   :  { %1642 = vmatmul.mubr.msk.f32.vlgmr.msra.gmra.mrb[10].mxu0 %vm455_vm3, %v1104_v11  ;;  %v1106_v16 = vmax.f32 %v1102_v12, 0.0 }
 0x6d1   :  { %v1105_v15 = vmax.f32 %v1101_v14, 0.0  ;;  %1723 = vmatpush3.bf16.msra.mxu0 %v1720_v52 }
 0x6d2   :  { %1725 = vmatprep.subr.bf16.mxu0 %v1724_v19 }
 0x6d3   :  { %1644 = vmatprep.mubr.msk.f32.mxu0 %vm455_vm3, %v1105_v15 }
 0x6d4   :  { %1645 = vmatmul.mubr.msk.f32.gmra.mrb[12].mxu0 %vm455_vm3, %v1106_v16 }
 0x6d5   :  { %1727 = vmatpush3.bf16.msra.mxu0 %v1724_v19 }
 0x7a3   :  { %v1643_v21 = vpop.f32.mrb[10].mxu0 }
 0x7a4   :  { %v1195_v22 = vadd.f32 %v1643_v21, %v1447_v20  ;;  %v1189_v23 = vpop.f32.mrb[11].mxu0 }
 0x7a5   :  { %v1190_v24 = vadd.f32 %v1447_v20, %v1189_v23 }
 0x7a6   :  { %v1209_v27 = vmax.f32 %v1195_v22, 0.0 }
 0x7a7   :  { %v1208_v25 = vmax.f32 %v1190_v24, 0.0  ;;  %v1646_v26 = vpop.f32.mrb[12].mxu0 }
 0x7a8   :  { %v1205_v28 = vadd.f32 %v1646_v26, %v1447_v20  ;;  %v1199_v30 = vpop.f32.mrb[13].mxu0 }
 0x7a9   :  { %v1200_v31 = vadd.f32 %v1447_v20, %v1199_v30  ;;  %1655 = vmatprep.mubr.msk.f32.mxu0 %vm455_vm3, %v1208_v25 }
 0x7aa   :  { %1656 = vmatmul.mubr.msk.f32.vlgmr.msra.gmra.mrb[14].mxu0 %vm455_vm3, %v1209_v27  ;;  %v1211_v33 = vmax.f32 %v1205_v28, 0.0 }
 0x7ab   :  { %v1210_v32 = vmax.f32 %v1200_v31, 0.0 }
 0x7ad   :  { %1658 = vmatprep.mubr.msk.f32.mxu0 %vm455_vm3, %v1210_v32 }
 0x7ae   :  { %1659 = vmatmul.mubr.msk.f32.gmra.mrb[16].mxu0 %vm455_vm3, %v1211_v33 }
 0x87d   :  { %v1657_v35 = vpop.f32.mrb[14].mxu0 }
 0x87e   :  { %v1300_v36 = vadd.f32 %v1657_v35, %v1452_v34  ;;  %v1294_v37 = vpop.f32.mrb[15].mxu0 }
 0x87f   :  { %v1295_v39 = vadd.f32 %v1452_v34, %v1294_v37 }
 0x881   :  { %v1728_v40 = vpack.c.bf16 %v1300_v36, %v1295_v39  ;;  %v1660_v41 = vpop.f32.mrb[16].mxu0 }
 0x882   :  { %v1310_v42 = vadd.f32 %v1660_v41, %v1452_v34  ;;  %v1304_v43 = vpop.f32.mrb[17].mxu0 }
 0x883   :  { %v1305_v44 = vadd.f32 %v1452_v34, %v1304_v43  ;;  %1729 = vmatprep.subr.bf16.mxu1 %v1728_v40 }
 0x884   :  { %1731 = vmatpush3.bf16.msra.mxu1 %v1728_v40 }
 0x885   :  { %v1732_v45 = vpack.c.bf16 %v1310_v42, %v1305_v44 }
 0x887   :  { %1733 = vmatprep.subr.bf16.mxu1 %v1732_v45 }
 0x888   :  { %1735 = vmatpush3.bf16.msra.mxu1 %v1732_v45 }
 0x88b   :  { %1670 = vmatmul.mubr.msk.f32.vlgmr.msra.gmra.mrb[14].mxu1 %vm455_vm3, %v1905_v29 }
 0x95e   :  { %v1671_v55 = vpop.f32.mrb[14].mxu1 }
 0x95f   :  { %v1397_v56 = vsel %vm19_vm1, %v1671_v55, %v1393_v47  ;;  %v1379_v57 = vpop.f32.mrb[15].mxu1 }
 0x960   :  { %1400 = vst.msk [vmem:[%s1999_s4 + $0x8] sm:$0xff] %vm1398_vm6, %v1397_v56  ;;  %v1396_v58 = vsel %vm19_vm1, %v1379_v57, %v1391_v46 }
 0x961   :  { %1399 = vst.msk [vmem:[%s1999_s4] sm:$0xff] %vm1398_vm6, %v1396_v58 }

</bundles_post_ra>
